<compile_context>
chip_gen: v7x
topology: tpu7x:2x2x1
jax: 0.10.0
libtpu: 0.0.40
codegen_flags: <defaults>
</compile_context>

<pallas_src>
import functools

import numpy as np
import jax
import jax.numpy as jnp
from jax.experimental import pallas as pl
from jax.experimental.pallas import tpu as pltpu

BN_EPS = 1e-5


def _round_up(v, m):
    return -(-v // m) * m


# ----------------------------------------------------------------------------
# Pallas kernel: fused ReLU -> 1..2 matmuls (1x1 convs, BN pre-folded)
#                -> in-vreg channel concat -> +bias -> single lane-dense store
# ----------------------------------------------------------------------------
def _make_relu_conv_kernel(n_branches):
    def kernel(*refs):
        a_refs = refs[:n_branches]
        w_refs = refs[n_branches:2 * n_branches]
        b_ref = refs[2 * n_branches]
        o_ref = refs[2 * n_branches + 1]
        parts = []
        for a_ref, w_ref in zip(a_refs, w_refs):
            a = jnp.maximum(a_ref[...], 0)                       # ReLU on VPU
            parts.append(jnp.dot(a, w_ref[...],
                                 preferred_element_type=jnp.float32))
        acc = parts[0] if n_branches == 1 else jnp.concatenate(parts, axis=-1)
        o_ref[...] = (acc + b_ref[...]).astype(o_ref.dtype)
    return kernel


def pallas_relu_conv1x1(acts, weights, bias, *, tm_target=1024,
                        out_dtype=jnp.float32):
    """Fused ReLU -> per-branch (M,K_i)@(K_i,N_i) -> concat(N) -> +bias.

    acts:    list of (M, K_i) activation matrices (one per conv branch)
    weights: list of (K_i, N_i) weight matrices (BN scale already folded in)
    bias:    (sum(N_i),) bias with BN shift already folded in
    """
    n = len(acts)
    M = int(acts[0].shape[0])
    N = sum(int(w.shape[1]) for w in weights)

    # Pad the pixel axis only to the sublane multiple (8 f32 / 16 bf16);
    # ragged last grid tiles are handled by Pallas read/write masking.
    mult = 16 if acts[0].dtype == jnp.bfloat16 else 8
    m_pad = _round_up(M, mult)

    if m_pad <= tm_target:
        # Split into >=2 grid steps so both v7x TensorCores get work.
        tm = _round_up(pl.cdiv(m_pad, 2), mult)
    else:
        tm = tm_target
    grid = pl.cdiv(m_pad, tm)

    if m_pad != M:
        acts = [jnp.pad(a, ((0, m_pad - M), (0, 0))) for a in acts]

    in_specs = (
        [pl.BlockSpec((tm, int(a.shape[1])), lambda i: (i, 0)) for a in acts]
        + [pl.BlockSpec((int(w.shape[0]), int(w.shape[1])), lambda i: (0, 0))
           for w in weights]
        + [pl.BlockSpec((1, N), lambda i: (0, 0))]
    )

    out = pl.pallas_call(
        _make_relu_conv_kernel(n),
        out_shape=jax.ShapeDtypeStruct((m_pad, N), out_dtype),
        grid=(grid,),
        in_specs=in_specs,
        out_specs=pl.BlockSpec((tm, N), lambda i: (i, 0)),
        compiler_params=pltpu.CompilerParams(
            dimension_semantics=("parallel",),
            # Let XLA fuse the NHWC transpose / subsample / dtype-cast
            # producers directly into the activation operands instead of
            # materializing intermediates in HBM.
            allow_input_fusion=[True] * n + [False] * (n + 1),
        ),
    )(*acts, *weights, bias.reshape(1, N))
    return out[:M] if m_pad != M else out


# ----------------------------------------------------------------------------
# One-time parameter preparation (inference BN folded into conv weight / bias)
# ----------------------------------------------------------------------------
def _fold_bn(w, b, gamma, beta, mean, var):
    scale = gamma / jnp.sqrt(var + BN_EPS)
    return w * scale[None, :], (b - mean) * scale + beta


def prepare_fit_params(params, filters, compute_dtype=jnp.bfloat16):
    """Fold inference BatchNorm into the 1x1 conv weights/biases and cast the
    weights to the kernel compute dtype.  Call ONCE, not per forward."""
    Fh = filters // 2
    w1, b1 = _fold_bn(params["w1"], params["b1"],
                      params["bn_gamma"][:Fh], params["bn_beta"][:Fh],
                      params["bn_mean"][:Fh], params["bn_var"][:Fh])
    w2, b2 = _fold_bn(params["w2"], params["b2"],
                      params["bn_gamma"][Fh:], params["bn_beta"][Fh:],
                      params["bn_mean"][Fh:], params["bn_var"][Fh:])
    wdr, bdr = _fold_bn(params["w_dr"], params["b_dr"],
                        params["dr_gamma"], params["dr_beta"],
                        params["dr_mean"], params["dr_var"])
    return {
        "w1": w1.astype(compute_dtype),
        "w2": w2.astype(compute_dtype),
        "b_cat": jnp.concatenate([b1, b2]).astype(jnp.float32),
        "w_dr": wdr.astype(compute_dtype),
        "b_dr": bdr.astype(jnp.float32),
    }


# ----------------------------------------------------------------------------
# Forward pass (mirrors Fit.forward)
# ----------------------------------------------------------------------------
def fit_forward(x, prev, fparams, filters):
    if prev is None:
        return x

    cdt = fparams["w1"].dtype   # compute dtype chosen at prepare time

    if x.shape[2] != prev.shape[2]:
        # ---- factorized reduction branch ----
        # relu -> {stride-2 subsample, shift-up-left & subsample} -> two 1x1
        # convs -> channel concat -> BN.  Convs + bias + BN + concat are fused
        # in one Pallas kernel; ReLU is applied in-kernel (valid since
        # ReLU(0)=0 commutes with the zero pad/shift/subsample).
        B, Cp, H, W = prev.shape
        prev_cl = jnp.transpose(prev, (0, 2, 3, 1))              # NHWC
        a1 = prev_cl[:, ::2, ::2, :]
        shifted = jnp.pad(prev_cl, ((0, 0), (0, 1), (0, 1), (0, 0)))[:, 1:, 1:, :]
        a2 = shifted[:, ::2, ::2, :]
        Ho, Wo = a1.shape[1], a1.shape[2]
        a1 = a1.reshape(B * Ho * Wo, Cp).astype(cdt)
        a2 = a2.reshape(B * Ho * Wo, Cp).astype(cdt)
        # TODO(synk): the stride-2 subsample/shift could also be folded into
        # the kernel via a (2*th, W, C) row-slab BlockSpec; kept as XLA glue
        # here and exposed to input fusion via allow_input_fusion.
        y = pallas_relu_conv1x1([a1, a2],
                                [fparams["w1"], fparams["w2"]],
                                fparams["b_cat"])
        return jnp.transpose(y.reshape(B, Ho, Wo, filters), (0, 3, 1, 2))

    elif prev.shape[1] != filters:
        # ---- dim_reduce branch: ReLU -> Conv1x1 -> BN (one fused kernel) ----
        B, Cp, H, W = prev.shape
        a = jnp.transpose(prev, (0, 2, 3, 1)).reshape(B * H * W, Cp).astype(cdt)
        y = pallas_relu_conv1x1([a], [fparams["w_dr"]], fparams["b_dr"])
        return jnp.transpose(y.reshape(B, H, W, filters), (0, 3, 1, 2))

    return prev


# ----------------------------------------------------------------------------
# Pure-JAX reference (mirrors the PyTorch ops literally, inference BN, f32)
# ----------------------------------------------------------------------------
def fit_reference(x, prev, params, filters):
    hp = functools.partial(jnp.einsum, precision="highest")
    if prev is None:
        return x
    if x.shape[2] != prev.shape[2]:
        p = jax.nn.relu(prev)
        p1in = p[:, :, ::2, ::2]
        p1 = hp("bchw,cf->bfhw", p1in, params["w1"]) + params["b1"][None, :, None, None]
        pp = jnp.pad(p, ((0, 0), (0, 0), (0, 1), (0, 1)))[:, :, 1:, 1:]
        p2in = pp[:, :, ::2, ::2]
        p2 = hp("bchw,cf->bfhw", p2in, params["w2"]) + params["b2"][None, :, None, None]
        cat = jnp.concatenate([p1, p2], axis=1)
        scale = params["bn_gamma"] / jnp.sqrt(params["bn_var"] + BN_EPS)
        return ((cat - params["bn_mean"][None, :, None, None])
                * scale[None, :, None, None]
                + params["bn_beta"][None, :, None, None])
    elif prev.shape[1] != filters:
        p = jax.nn.relu(prev)
        y = hp("bchw,cf->bfhw", p, params["w_dr"]) + params["b_dr"][None, :, None, None]
        scale = params["dr_gamma"] / jnp.sqrt(params["dr_var"] + BN_EPS)
        return ((y - params["dr_mean"][None, :, None, None])
                * scale[None, :, None, None]
                + params["dr_beta"][None, :, None, None])
    return prev


# ----------------------------------------------------------------------------
# main
# ----------------------------------------------------------------------------
if __name__ == "__main__":
    prev_filters, filters = 64, 128
    B = 2
    assert filters % 2 == 0

    key = jax.random.PRNGKey(0)
    ks = jax.random.split(key, 16)
    Fh = filters // 2
    params = {
        # p1 / p2 1x1 convs (weights stored as (Cin, Cout))
        "w1": jax.random.normal(ks[0], (prev_filters, Fh), jnp.float32) * 0.05,
        "b1": jax.random.normal(ks[1], (Fh,), jnp.float32) * 0.05,
        "w2": jax.random.normal(ks[2], (prev_filters, Fh), jnp.float32) * 0.05,
        "b2": jax.random.normal(ks[3], (Fh,), jnp.float32) * 0.05,
        # BatchNorm2d(filters) inference stats
        "bn_gamma": jax.random.normal(ks[4], (filters,), jnp.float32) * 0.1 + 1.0,
        "bn_beta": jax.random.normal(ks[5], (filters,), jnp.float32) * 0.1,
        "bn_mean": jax.random.normal(ks[6], (filters,), jnp.float32) * 0.1,
        "bn_var": jnp.abs(jax.random.normal(ks[7], (filters,), jnp.float32)) * 0.2 + 0.8,
        # dim_reduce conv + BN
        "w_dr": jax.random.normal(ks[8], (prev_filters, filters), jnp.float32) * 0.05,
        "b_dr": jax.random.normal(ks[9], (filters,), jnp.float32) * 0.05,
        "dr_gamma": jax.random.normal(ks[10], (filters,), jnp.float32) * 0.1 + 1.0,
        "dr_beta": jax.random.normal(ks[11], (filters,), jnp.float32) * 0.1,
        "dr_mean": jax.random.normal(ks[12], (filters,), jnp.float32) * 0.1,
        "dr_var": jnp.abs(jax.random.normal(ks[13], (filters,), jnp.float32)) * 0.2 + 0.8,
    }

    # inputs: x at the (already reduced) resolution, prev at 2x resolution
    x = jax.random.normal(ks[14], (B, filters, 8, 8), jnp.float32)
    prev_big = jax.random.normal(ks[15], (B, prev_filters, 16, 16), jnp.float32)
    prev_small = jax.random.normal(ks[15], (B, prev_filters, 8, 8), jnp.float32)

    # One-time BN folding / dtype prep (not re-derived inside every forward).
    fparams_f32 = prepare_fit_params(params, filters, jnp.float32)
    fparams_bf16 = prepare_fit_params(params, filters, jnp.bfloat16)  # v6e/v7x

    fwd = jax.jit(functools.partial(fit_forward, filters=filters))

    ref1 = jax.block_until_ready(fit_reference(x, prev_big, params, filters))
    ref2 = jax.block_until_ready(fit_reference(x, prev_small, params, filters))

    # --- branch 1 & 2, f32 compute path: tight check ---
    out1 = jax.block_until_ready(fwd(x, prev_big, fparams_f32))
    assert out1.shape == (B, filters, 8, 8)
    np.testing.assert_allclose(np.asarray(out1), np.asarray(ref1),
                               rtol=1e-4, atol=1e-4)

    out2 = jax.block_until_ready(fwd(x, prev_small, fparams_f32))
    assert out2.shape == (B, filters, 8, 8)
    np.testing.assert_allclose(np.asarray(out2), np.asarray(ref2),
                               rtol=1e-4, atol=1e-4)

    # --- branch 1 & 2, bf16 compute path (halved HBM traffic on v6e/v7x):
    #     relaxed tolerance due to bf16 operand quantization (f32 accumulate).
    out1b = jax.block_until_ready(fwd(x, prev_big, fparams_bf16))
    np.testing.assert_allclose(np.asarray(out1b), np.asarray(ref1),
                               rtol=5e-2, atol=5e-2)
    out2b = jax.block_until_ready(fwd(x, prev_small, fparams_bf16))
    np.testing.assert_allclose(np.asarray(out2b), np.asarray(ref2),
                               rtol=5e-2, atol=5e-2)

    # --- branch 3: prev is None -> passthrough of x ---
    out3 = jax.block_until_ready(fwd(x, None, fparams_f32))
    np.testing.assert_allclose(np.asarray(out3), np.asarray(x))

    print("KERNEL_OK")
</pallas_src>

<mosaic_0001>
module attributes {stable_mosaic.version = 11 : i64} {
  func.func @kernel(%arg0: i32, %arg1: memref<64x64xf32, #tpu.memory_space<vmem>>, %arg2: memref<64x64xf32, #tpu.memory_space<vmem>>, %arg3: memref<64x64xf32, #tpu.memory_space<vmem>>, %arg4: memref<64x64xf32, #tpu.memory_space<vmem>>, %arg5: memref<1x128xf32, #tpu.memory_space<vmem>>, %arg6: memref<64x128xf32, #tpu.memory_space<vmem>>) attributes {dimension_semantics = [#tpu.dimension_semantics<parallel>], iteration_bounds = array<i64: 2>, scalar_prefetch = 0 : i64, scratch_operands = 0 : i64, tpu.core_type = #tpu.core_type<tc>, window_params = [{transform_indices = @transform_0, window_bounds = array<i64: 64, 64>}, {transform_indices = @transform_1, window_bounds = array<i64: 64, 64>}, {pipeline_mode = #tpu.pipeline_mode<synchronous>, transform_indices = @transform_2, window_bounds = array<i64: 64, 64>}, {pipeline_mode = #tpu.pipeline_mode<synchronous>, transform_indices = @transform_3, window_bounds = array<i64: 64, 64>}, {pipeline_mode = #tpu.pipeline_mode<synchronous>, transform_indices = @transform_4, window_bounds = array<i64: 1, 128>}, {transform_indices = @transform_5, window_bounds = array<i64: 64, 128>}]} {
    %c0 = arith.constant 0 : index
    %c0_0 = arith.constant 0 : index
    %0 = vector.load %arg1[%c0, %c0_0] : memref<64x64xf32, #tpu.memory_space<vmem>>, vector<64x64xf32>
    %cst = arith.constant 0.000000e+00 : f32
    %1 = vector.broadcast %cst : f32 to vector<64x64xf32>
    %2 = arith.maximumf %0, %1 : vector<64x64xf32>
    %c0_1 = arith.constant 0 : index
    %c0_2 = arith.constant 0 : index
    %3 = vector.load %arg3[%c0_1, %c0_2] : memref<64x64xf32, #tpu.memory_space<vmem>>, vector<64x64xf32>
    %cst_3 = arith.constant dense<0.000000e+00> : vector<64x64xf32>
    %4 = tpu.matmul %2, %3, %cst_3 {dimension_numbers = #tpu.dot_dimension_numbers<[1], [0], [0], [1], [0, 0, 1, 1], [], []>} : vector<64x64xf32>, vector<64x64xf32>, vector<64x64xf32> -> vector<64x64xf32>
    %c0_4 = arith.constant 0 : index
    %c0_5 = arith.constant 0 : index
    %5 = vector.load %arg2[%c0_4, %c0_5] : memref<64x64xf32, #tpu.memory_space<vmem>>, vector<64x64xf32>
    %cst_6 = arith.constant 0.000000e+00 : f32
    %6 = vector.broadcast %cst_6 : f32 to vector<64x64xf32>
    %7 = arith.maximumf %5, %6 : vector<64x64xf32>
    %c0_7 = arith.constant 0 : index
    %c0_8 = arith.constant 0 : index
    %8 = vector.load %arg4[%c0_7, %c0_8] : memref<64x64xf32, #tpu.memory_space<vmem>>, vector<64x64xf32>
    %cst_9 = arith.constant dense<0.000000e+00> : vector<64x64xf32>
    %9 = tpu.matmul %7, %8, %cst_9 {dimension_numbers = #tpu.dot_dimension_numbers<[1], [0], [0], [1], [0, 0, 1, 1], [], []>} : vector<64x64xf32>, vector<64x64xf32>, vector<64x64xf32> -> vector<64x64xf32>
    %10 = tpu.concatenate %4, %9 in 1 : vector<64x64xf32>, vector<64x64xf32> -> vector<64x128xf32>
    %c0_10 = arith.constant 0 : index
    %c0_11 = arith.constant 0 : index
    %11 = vector.load %arg5[%c0_10, %c0_11] : memref<1x128xf32, #tpu.memory_space<vmem>>, vector<1x128xf32>
    %12 = vector.broadcast %11 : vector<1x128xf32> to vector<64x128xf32>
    %13 = arith.addf %10, %12 : vector<64x128xf32>
    %c0_12 = arith.constant 0 : index
    %c0_13 = arith.constant 0 : index
    %14 = vector.load %arg6[%c0_12, %c0_13] : memref<64x128xf32, #tpu.memory_space<vmem>>, vector<64x128xf32>
    tpu.vector_store %arg6[%c0_12, %c0_13], %13 {strides = array<i32>} : memref<64x128xf32, #tpu.memory_space<vmem>>, vector<64x128xf32>,
    return
  }
  func.func @transform_0(%arg0: i32) -> (i32, i32) {
    %c0_i32 = arith.constant 0 : i32
    %c0_i32_0 = arith.constant 0 : i32
    return %arg0, %c0_i32 : i32, i32
  }
  func.func @transform_1(%arg0: i32) -> (i32, i32) {
    %c0_i32 = arith.constant 0 : i32
    %c0_i32_0 = arith.constant 0 : i32
    return %arg0, %c0_i32 : i32, i32
  }
  func.func @transform_2(%arg0: i32) -> (i32, i32) {
    %c0_i32 = arith.constant 0 : i32
    %c0_i32_0 = arith.constant 0 : i32
    %c0_i32_1 = arith.constant 0 : i32
    return %c0_i32, %c0_i32_0 : i32, i32
  }
  func.func @transform_3(%arg0: i32) -> (i32, i32) {
    %c0_i32 = arith.constant 0 : i32
    %c0_i32_0 = arith.constant 0 : i32
    %c0_i32_1 = arith.constant 0 : i32
    return %c0_i32, %c0_i32_0 : i32, i32
  }
  func.func @transform_4(%arg0: i32) -> (i32, i32) {
    %c0_i32 = arith.constant 0 : i32
    %c0_i32_0 = arith.constant 0 : i32
    %c0_i32_1 = arith.constant 0 : i32
    return %c0_i32, %c0_i32_0 : i32, i32
  }
  func.func @transform_5(%arg0: i32) -> (i32, i32) {
    %c0_i32 = arith.constant 0 : i32
    %c0_i32_0 = arith.constant 0 : i32
    return %arg0, %c0_i32 : i32, i32
  }
}

</mosaic_0001>

<bundles_post_ra>
// kernel: fit_forward.1
= control target key start
LH: loop header
LB: loop body
LE: loop exit
PB: predicated region body
PF: predicated region fallthrough
CT: control target
= control target key end

     0   :  { %10 = vsyncpa [#allocation3], 0  ;;  %s1213_s0 = inlined_call_operand.vmem [shape: f32[128,64], index: 0, kind: input, shape index: {}]   ;;  %s1214_s1 = inlined_call_operand.vmem [shape: f32[128,64], index: 1, kind: input, shape index: {}]   ;;  %s1215_s2 = inlined_call_operand.vmem [shape: f32[64,64], index: 2, kind: input, shape index: {}]   ;;  %s1216_s3 = inlined_call_operand.vmem [shape: f32[64,64], index: 3, kind: input, shape index: {}]   ;;  %s1217_s4 = inlined_call_operand.vmem [shape: f32[1,128], index: 4, kind: input, shape index: {}]   ;;  %s1218_s5 = inlined_call_operand.hbm [shape: f32[128,128], index: 5, kind: output, shape index: {}]  }
   0x1   :  { %12 = vsyncpa [#allocation3 + $0x1], 0  ;;  %s998_s18 = smov 0   ;;  %s1000_s19 = smov 0  }
   0x2   :  { %s1002_s20 = smov 0   ;;  %s1004_s21 = smov 0  }
   0x3 LB: > { %s1019_s22 = sadd.s32 4294967295, %s962_s21   ;;  %s706_s23 = sadd.s32 4294967294, %s962_s21   ;;  %s962_s21 = sphi %s1004_s21, %s1224_s21   ;;  %s958_s20 = sphi %s1002_s20, %s1223_s20   ;;  %s954_s19 = sphi %s1000_s19, %s1222_s19   ;;  %s950_s18 = sphi %s998_s18, %s1221_s18  }
   0x4   : > { %s1023_s24 = sadd.s32 1, %s962_s21   ;;  %s140_s25 = sadd.s32 1, %s958_s20 }
   0x5   : > { %s137_s26 = ssub.s32 %s962_s21, %s1023_s24  ;;  %p150_p0 = scmp.ne.s32.totalorder %s958_s20, %s954_s19 }
   0x6   : > { %p138_p1 = scmp.eq.s32.totalorder %s137_s26, 0  ;;  %p151_p2 = scmp.eq.s32.totalorder %s1019_s22, 1 }
   0x7   : > { %p156_p3 = scmp.ne.s32.totalorder %s954_s19, %s950_s18  ;;  %p157_p4 = scmp.eq.s32.totalorder %s706_s23, 1 }
   0x8   : > { %s1034_s27 = scalar_select %p138_p1, %s958_s20, %s140_s25  }
   0x9   : > { %p1036_p5 = por %p151_p2, %p150_p0  ;;  %p1040_p6 = por %p157_p4, %p156_p3 }
   0xa   : > { %p709_p7 = scmp.ge.s32.totalorder %s962_s21, 1  ;;  %p202_p8 = scmp.lt.s32.totalorder %s962_s21, 3 }
   0xc   : > { %p203_p9 = pnand %p709_p7, %p202_p8 }
   0xd   : > { %v418_v0 = vld [vmem:[%s1216_s3] sm:$0xff] (!%p203_p9)  ;;  %v419_v1 = vld [vmem:[%s1216_s3 + $0x8] sm:$0xff] (!%p203_p9)  ;;  %v420_v2 = vld [vmem:[%s1216_s3 + $0x10] sm:$0xff] (!%p203_p9)  ;;  %s711_s11 = sshll.u32 (!%p203_p9), %s1019_s22, 3  ;;  %vm272_vm0 = vcmask (!%p203_p9), 523264   ;;  %s964_s14 = smov (!%p203_p9), 64  }
   0xe   : > { %206 = sbr.rel (%p203_p9) target bundleno = 393 (0x189), region = 40  ;;  %v842_v3 = vpack.c.bf16 (!%p203_p9), %v419_v1, %v418_v0  ;;  %v421_v4 = vld [vmem:[%s1216_s3 + $0x18] sm:$0xff] (!%p203_p9)  ;;  %p236_p10 = scmp.lt.s32.totalorder (!%p203_p9), %s711_s11, 15  ;;  %v422_v6 = vld [vmem:[%s1216_s3 + $0x20] sm:$0xff] (!%p203_p9)  ;;  %v423_v7 = vld [vmem:[%s1216_s3 + $0x28] sm:$0xff] (!%p203_p9) }
   0xf   : > { %v846_v5 = vpack.c.bf16 (!%p203_p9), %v421_v4, %v420_v2  ;;  %v264_v8 = vld [vmem:[%s1215_s2] sm:$0xff] (!%p203_p9)  ;;  %v265_v9 = vld [vmem:[%s1215_s2 + $0x8] sm:$0xff] (!%p203_p9)  ;;  %v266_v10 = vld [vmem:[%s1215_s2 + $0x10] sm:$0xff] (!%p203_p9)  ;;  %v850_v14 = vpack.c.bf16 (!%p203_p9), %v423_v7, %v422_v6  ;;  %s232_s15 = sand.u32 (!%p203_p9), 1, %s954_s19   ;;  %s737_s26 = sshll.u32 (!%p203_p9), %s1019_s22, 10 }
  0x10   : > { %843 = vmatprep.subr.bf16.mxu1 (!%p203_p9), %v842_v3  ;;  %v267_v11 = vld [vmem:[%s1215_s2 + $0x18] sm:$0xff] (!%p203_p9)  ;;  %v826_v12 = vpack.c.bf16 (!%p203_p9), %v265_v9, %v264_v8  ;;  %v268_v15 = vld [vmem:[%s1215_s2 + $0x20] sm:$0xff] (!%p203_p9)  ;;  %v269_v16 = vld [vmem:[%s1215_s2 + $0x28] sm:$0xff] (!%p203_p9)  ;;  %s710_s16 = sshll.u32 (!%p203_p9), %s232_s15, 6  ;;  %s1165_s7 = scalar_lea.hbm (!%p203_p9), %s1218_s5, %s737_s26 }
  0x11   : > { %845 = vmatpush3.bf16.msra.mxu1 (!%p203_p9), %v842_v3  ;;  %v830_v13 = vpack.c.bf16 (!%p203_p9), %v267_v11, %v266_v10  ;;  %v424_v17 = vld [vmem:[%s1216_s3 + $0x30] sm:$0xff] (!%p203_p9)  ;;  %v425_v18 = vld [vmem:[%s1216_s3 + $0x38] sm:$0xff] (!%p203_p9)  ;;  %v834_v21 = vpack.c.bf16 (!%p203_p9), %v269_v16, %v268_v15  ;;  %v731_v8 = vld [vmem:[%s1217_s4] ss:$0 sm:$0xff] (!%p203_p9)  ;;  %s1144_s25 = scalar_lea.vmem (!%p203_p9), [#allocation2], %s710_s16  ;;  %s1172_s22 = scalar_lea.sflag (!%p203_p9), [#allocation3], %s232_s15 }
  0x12   : > { %847 = vmatprep.subr.bf16.mxu1 (!%p203_p9), %v846_v5  ;;  %827 = vmatprep.subr.bf16.mxu0 (!%p203_p9), %v826_v12  ;;  %v854_v22 = vpack.c.bf16 (!%p203_p9), %v425_v18, %v424_v17  ;;  %v270_v23 = vld [vmem:[%s1215_s2 + $0x30] sm:$0xff] (!%p203_p9)  ;;  %v271_v24 = vld [vmem:[%s1215_s2 + $0x38] sm:$0xff] (!%p203_p9)  ;;  %s632_s30 = sshll.u32 (!%p203_p9), %s1144_s25, 4  ;;  %s965_s9 = smov (!%p203_p9), [#allocation2]   ;;  %s1167_s30 = int_to_ptr.vmem [resolvable:$true] %s632_s30 }
  0x13   : > { %829 = vmatpush3.bf16.msra.mxu0 (!%p203_p9), %v826_v12  ;;  %v838_v28 = vpack.c.bf16 (!%p203_p9), %v271_v24, %v270_v23  ;;  %s904_s12 = sshll.u32 (!%p203_p9), %s965_s9, 4  ;;  %s905_s12 = int_to_ptr.vmem [resolvable:$false] %s904_s12 }
  0x14   : > { %831 = vmatprep.subr.bf16.mxu0 (!%p203_p9), %v830_v13  ;;  %s906_s13 = scalar_lea.vmem (!%p203_p9), %s905_s12, 2048  ;;  %p907_p0 = scmp.lt.s32.totalorder (!%p203_p9), %s1167_s30, %s905_s12 }
  0x15   : > { %s1226_s11 = smov (!%p236_p10, %s711_s11), 15  ;;  %849 = vmatpush3.bf16.msra.mxu1 %v846_v5 }
  0x16   : > { %s712_s10 = sshll.u32 %s1226_s11, 3  ;;  %851 = vmatprep.subr.bf16.mxu1 %v850_v14 }
  0x17   : > { %s1092_s11 = scalar_lea.vmem %s1214_s1, %s712_s10  ;;  %s1097_s8 = scalar_lea.vmem %s1213_s0, %s712_s10  ;;  %833 = vmatpush3.bf16.msra.mxu0 %v830_v13 }
  0x18   : > { %v402_v19 = vld [vmem:[%s1092_s11] sm:$0xff]  ;;  %v403_v27 = vld [vmem:[%s1092_s11 + $0x8] sm:$0xff]  ;;  %835 = vmatprep.subr.bf16.mxu0 %v834_v21  ;;  %v404_v29 = vld [vmem:[%s1092_s11 + $0x10] sm:$0xff] }
  0x19   : > { %v410_v20 = vmax.f32 %v402_v19, 0.0  ;;  %v248_v25 = vld [vmem:[%s1097_s8] sm:$0xff]  ;;  %853 = vmatpush3.bf16.msra.mxu1 %v850_v14  ;;  %v411_v30 = vmax.f32 %v403_v27, 0.0  ;;  %v249_v31 = vld [vmem:[%s1097_s8 + $0x8] sm:$0xff]  ;;  %v412_v32 = vmax.f32 %v404_v29, 0.0  ;;  %v405_v33 = vld [vmem:[%s1092_s11 + $0x18] sm:$0xff] }
  0x1a   : > { %v256_v26 = vmax.f32 %v248_v25, 0.0  ;;  %855 = vmatprep.subr.bf16.mxu1 %v854_v22  ;;  %v250_v34 = vld [vmem:[%s1097_s8 + $0x10] sm:$0xff]  ;;  %v406_v35 = vld [vmem:[%s1092_s11 + $0x20] sm:$0xff]  ;;  %v257_v36 = vmax.f32 %v249_v31, 0.0  ;;  %v413_v37 = vmax.f32 %v405_v33, 0.0  ;;  %v251_v39 = vld [vmem:[%s1097_s8 + $0x18] sm:$0xff] }
  0x1b   : > { %814 = vmatprep.mubr.msk.f32.mxu1 %vm272_vm0, %v410_v20  ;;  %837 = vmatpush3.bf16.msra.mxu0 %v834_v21  ;;  %v258_v38 = vmax.f32 %v250_v34, 0.0  ;;  %v414_v40 = vmax.f32 %v406_v35, 0.0  ;;  %v407_v41 = vld [vmem:[%s1092_s11 + $0x28] sm:$0xff]  ;;  %v252_v42 = vld [vmem:[%s1097_s8 + $0x20] sm:$0xff]  ;;  %v408_v43 = vld [vmem:[%s1092_s11 + $0x30] sm:$0xff]  ;;  %v259_v44 = vmax.f32 %v251_v39, 0.0 }
  0x1c   : > { %786 = vmatprep.mubr.msk.f32.mxu0 %vm272_vm0, %v256_v26  ;;  %839 = vmatprep.subr.bf16.mxu0 %v838_v28  ;;  %v415_v45 = vmax.f32 %v407_v41, 0.0  ;;  %v260_v46 = vmax.f32 %v252_v42, 0.0  ;;  %v253_v47 = vld [vmem:[%s1097_s8 + $0x28] sm:$0xff]  ;;  %v416_v48 = vmax.f32 %v408_v43, 0.0  ;;  %v409_v49 = vld [vmem:[%s1092_s11 + $0x38] sm:$0xff]  ;;  %v254_v50 = vld [vmem:[%s1097_s8 + $0x30] sm:$0xff] }
  0x1d   : > { %857 = vmatpush3.bf16.msra.mxu1 %v854_v22  ;;  %v261_v51 = vmax.f32 %v253_v47, 0.0  ;;  %v417_v52 = vmax.f32 %v409_v49, 0.0  ;;  %v262_v53 = vmax.f32 %v254_v50, 0.0  ;;  %v255_v54 = vld [vmem:[%s1097_s8 + $0x38] sm:$0xff]  ;;  %s900_s8 = scalar_lea.vmem %s1167_s30, 1024 }
  0x1e   : > { %v263_v55 = vmax.f32 %v255_v54, 0.0  ;;  %p901_p11 = scmp.ne.s32.totalorder %s1167_s30, %s900_s8  ;;  %p908_p1 = scmp.lt.s32.totalorder %s906_s13, %s900_s8 }
  0x1f   : > { %841 = vmatpush3.bf16.msra.mxu0 %v838_v28 }
  0x20   : > { %815 = vmatmul.mubr.msk.f32.vlgmr.msra.gmra.mrb[0].mxu1 %vm272_vm0, %v411_v30  ;;  %p902_p12 = pnand %p901_p11, %p1036_p5  ;;  %p909_p2 = por %p908_p1, %p907_p0 }
  0x21   : > { %817 = vmatprep.mubr.msk.f32.mxu1 %vm272_vm0, %v412_v32 }
  0x22   : > { %787 = vmatmul.mubr.msk.f32.vlgmr.msra.gmra.mrb[0].mxu0 %vm272_vm0, %v257_v36  ;;  %p903_p13 = pneg %p902_p12 }
  0x23   : > { %789 = vmatprep.mubr.msk.f32.mxu0 %vm272_vm0, %v258_v38 }
  0x24   : > { %818 = vmatmul.mubr.msk.f32.gmra.mrb[2].mxu1 %vm272_vm0, %v413_v37  ;;  %p910_p3 = pnand %p909_p2, %p903_p13 }
  0x25   : > { %820 = vmatprep.mubr.msk.f32.mxu1 %vm272_vm0, %v414_v40 }
  0x26   : > { %790 = vmatmul.mubr.msk.f32.gmra.mrb[2].mxu0 %vm272_vm0, %v259_v44 }
  0x27   : > { %792 = vmatprep.mubr.msk.f32.mxu0 %vm272_vm0, %v260_v46 }
  0x28   : > { %821 = vmatmul.mubr.msk.f32.gmra.mrb[4].mxu1 %vm272_vm0, %v415_v45 }
  0x29   : > { %823 = vmatprep.mubr.msk.f32.mxu1 %vm272_vm0, %v416_v48 }
  0x2a   : > { %793 = vmatmul.mubr.msk.f32.gmra.mrb[4].mxu0 %vm272_vm0, %v261_v51 }
  0x2b   : > { %795 = vmatprep.mubr.msk.f32.mxu0 %vm272_vm0, %v262_v53 }
  0x2c   : > { %824 = vmatmul.mubr.msk.f32.gmra.mrb[6].mxu1 %vm272_vm0, %v417_v52 }
  0x2e   : > { %796 = vmatmul.mubr.msk.f32.gmra.mrb[6].mxu0 %vm272_vm0, %v263_v55 }
  0xf3   : > { %v816_v56 = vpop.f32.mrb[0].mxu1 }
  0xf4   : > { %565 = vrot.lane.b32.xlu0 %v816_v56, %s964_s14  ;;  %v516_v57 = vpop.f32.mrb[1].mxu1 }
  0xf5   : > { %v788_v58 = vpop.f32.mrb[0].mxu0 }
  0xf6   : > { %v363_v60 = vpop.f32.mrb[1].mxu0 }
  0xf7   : > { %v819_v59 = vpop.f32.mrb[2].mxu1 }
  0xf8   : > { %563 = vrot.lane.b32.xlu0 %v516_v57, %s964_s14  ;;  %569 = vrot.lane.b32.xlu1 %v819_v59, %s964_s14  ;;  %v526_v61 = vpop.f32.mrb[3].mxu1 }
  0xf9   : > { %v791_v62 = vpop.f32.mrb[2].mxu0 }
  0xfa   : > { %v373_v0 = vpop.f32.mrb[3].mxu0 }
  0xfb   : > { %v822_v63 = vpop.f32.mrb[4].mxu1 }
  0xfc   : > { %567 = vrot.lane.b32.xlu1 %v526_v61, %s964_s14  ;;  %v536_v1 = vpop.f32.mrb[5].mxu1 }
  0xfd   : > { %571 = vrot.lane.b32.xlu0 %v536_v1, %s964_s14  ;;  %v794_v2 = vpop.f32.mrb[4].mxu0 }
  0xfe   : > { %v383_v4 = vpop.f32.mrb[5].mxu0 }
  0xff   : > { %v825_v3 = vpop.f32.mrb[6].mxu1 }
 0x100   : > { %573 = vrot.lane.b32.xlu1 %v822_v63, %s964_s14  ;;  %v546_v5 = vpop.f32.mrb[7].mxu1 }
 0x101   : > { %575 = vrot.lane.b32.xlu0 %v546_v5, %s964_s14  ;;  %v797_v6 = vpop.f32.mrb[6].mxu0 }
 0x102   : > { %v393_v7 = vpop.f32.mrb[7].mxu0 }
 0x104   : > { %577 = vrot.lane.b32.xlu1 %v825_v3, %s964_s14 }
 0x166   : > { %v566_v9 = vpop.permute.xlu0 %565 }
 0x167   : > { %v588_v10 = vsel %vm272_vm0, %v788_v58, %v566_v9 }
 0x168   : > { %v603_v11 = vadd.f32 %v731_v8, %v588_v10 }
 0x16a   : > { %611 = vst [vmem:[%s1144_s25 + $0x8] sm:$0xff] %v603_v11  ;;  %v564_v12 = vpop.permute.xlu0 %563  ;;  %v570_v13 = vpop.permute.xlu1 %569 }
 0x16b   : > { %v587_v14 = vsel %vm272_vm0, %v363_v60, %v564_v12  ;;  %v590_v15 = vsel %vm272_vm0, %v791_v62, %v570_v13 }
 0x16c   : > { %v602_v16 = vadd.f32 %v731_v8, %v587_v14  ;;  %v605_v17 = vadd.f32 %v731_v8, %v590_v15 }
 0x16e   : > { %610 = vst [vmem:[%s1144_s25] sm:$0xff] %v602_v16  ;;  %613 = vst [vmem:[%s1144_s25 + $0x18] sm:$0xff] %v605_v17  ;;  %v568_v18 = vpop.permute.xlu1 %567 }
 0x16f   : > { %v589_v19 = vsel %vm272_vm0, %v373_v0, %v568_v18  ;;  %v572_v20 = vpop.permute.xlu0 %571 }
 0x170   : > { %v604_v21 = vadd.f32 %v731_v8, %v589_v19  ;;  %v591_v22 = vsel %vm272_vm0, %v383_v4, %v572_v20 }
 0x171   : > { %v606_v23 = vadd.f32 %v731_v8, %v591_v22 }
 0x172   : > { %612 = vst [vmem:[%s1144_s25 + $0x10] sm:$0xff] %v604_v21  ;;  %v574_v24 = vpop.permute.xlu1 %573 }
 0x173   : > { %614 = vst [vmem:[%s1144_s25 + $0x20] sm:$0xff] %v606_v23  ;;  %v592_v25 = vsel %vm272_vm0, %v794_v2, %v574_v24  ;;  %v576_v26 = vpop.permute.xlu0 %575 }
 0x174   : > { %v607_v27 = vadd.f32 %v731_v8, %v592_v25  ;;  %v593_v28 = vsel %vm272_vm0, %v393_v7, %v576_v26 }
 0x175   : > { %v608_v29 = vadd.f32 %v731_v8, %v593_v28 }
 0x176   : > { %615 = vst [vmem:[%s1144_s25 + $0x28] sm:$0xff] %v607_v27  ;;  %v578_v30 = vpop.permute.xlu1 %577 }
 0x177   : > { %616 = vst [vmem:[%s1144_s25 + $0x30] sm:$0xff] %v608_v29  ;;  %v594_v31 = vsel %vm272_vm0, %v797_v6, %v578_v30 }
 0x178   : > { %v609_v32 = vadd.f32 %v731_v8, %v594_v31 }
 0x17a   : > { %617 = vst [vmem:[%s1144_s25 + $0x38] sm:$0xff] %v609_v32 }
 0x17b   : > { %913 = shalt.err (!%p910_p3)
}
 0x17c   : > { %s914_s10 = scalar_lea.hbm %s1165_s7, 1024  ;;  %s918_s16 = scalar_lea.hbm %s1218_s5, 2048 }
 0x17d   : > { %p915_p4 = scmp.ne.s32.totalorder %s1165_s7, %s914_s10  ;;  %p919_p9 = scmp.lt.u32.totalorder %s1165_s7, %s1218_s5 }
 0x17e   : > { %p920_p10 = scmp.lt.u32.totalorder %s918_s16, %s914_s10  ;;  %p922_p12 = scmp.lt.u32.totalorder %s914_s10, %s1165_s7 }
 0x17f   : > { %p916_p7 = pnand %p915_p4, %p1036_p5 }
 0x180   : > { %p921_p11 = por %p920_p10, %p919_p9 }
 0x181   : > { %p917_p8 = pneg %p916_p7 }
 0x182   : > { %p923_p13 = por %p922_p12, %p921_p11 }
 0x184   : > { %p924_p0 = pnand %p923_p13, %p917_p8 }
 0x186   : > { %927 = shalt.err (!%p924_p0)
}
 0x187   : > { %s966_s25 = smov 128   ;;  %s967_s26 = smov 8  }
 0x188   : > { %858 = dma.vmem_to_hbm [thread:$0]  (%p1036_p5), %s1167_s30, 1024, %s1165_s7, %s1172_s22, %s966_s25, %s966_s25, %s967_s26  }
 0x189 PF: > { %p864_p1 = scmp.ge.s32.totalorder %s962_s21, 2  ;;  %s647_s11 = sand.u32 1, %s950_s18  }
 0x18a   : > { %s648_s6 = scalar_lea.sflag [#allocation3], %s647_s11 }
 0x18b   : > { %p861_p2 = pnand %p864_p1, %p1040_p6 }
 0x18d   : > { %945 = dma.done.wait (!%p861_p2), %s648_s6, 1024  }
 0x18e   : > { %947 = vsyncadd (!%p861_p2), %s648_s6, 4294966272  ;;  %p15_p3 = scmp.ge.s32.totalorder %s1023_s24, 4   ;;  %s1221_s18 = smov %s954_s19 }
 0x18f   : > { %s1222_s19 = smov %s958_s20  ;;  %s1223_s20 = smov %s1034_s27 }
 0x190   : > { %s1224_s21 = smov %s1023_s24  ;;  %17 = sbr.rel (!%p15_p3) target bundleno = 3 (0x3), region = 78 }
 0x197   :  { %653 = vsyncpa [#allocation3], 1 }
 0x198   :  { %655 = vsyncpa [#allocation3 + $0x1], 1 }

</bundles_post_ra>
